<compile_context>
chip_gen: v7x
topology: tpu7x:2x2x1
jax: 0.10.0
libtpu: 0.0.40
codegen_flags: <defaults>
</compile_context>

<pallas_src>
import jax
import jax.numpy as jnp
from jax.experimental import pallas as pl
from jax.experimental.pallas import tpu as pltpu

_MAX_BLOCK_ELEMS = 1024 * 1024   # ~4 MiB f32 per array per block
_MAX_ROWS = 512                  # sublane-dim cap (multiple of 8)
_MIN_BLOCKS = 8                  # keep both v7x TensorCores fed with several blocks each


def _lane_dense_shape(B, C, H, W):
    """2-D layout of the flattened heatmap whose last dim is a multiple of 128
    whenever the total element count allows it (unmasked lane-dense vst)."""
    R, HW = B * C, H * W
    if HW % 128 == 0:
        return R, HW
    total = R * HW
    max_cols = min(total, 64 * 1024)
    for cols in range(max_cols - max_cols % 128, 0, -128):
        if total % cols == 0:
            return total // cols, cols
    # No 128-multiple factorization: fall back to (R, HW); tail stores are masked.
    return R, HW


def _choose_tiles(rows, cols):
    """Largest (8,128)-legal block within the VMEM budget, then split further if
    needed so the grid has enough blocks to shard across TensorCores (v7x)."""
    tr = rows if rows <= _MAX_ROWS else _MAX_ROWS
    col_budget = max(128, (_MAX_BLOCK_ELEMS // max(tr, 1)) // 128 * 128)
    tc = cols if cols <= col_budget else col_budget

    def nblocks(a, b):
        return pl.cdiv(rows, a) * pl.cdiv(cols, b)

    # Prefer splitting rows (keeps output stores lane-dense over wide columns).
    while nblocks(tr, tc) < _MIN_BLOCKS and tr >= 16:
        tr = max(8, (tr // 2 + 7) // 8 * 8)
    while nblocks(tr, tc) < _MIN_BLOCKS and tc >= 256:
        tc = max(128, (tc // 2 + 127) // 128 * 128)
    return tr, tc


def _focal_kernel(scalars_ref, out_ref, target_ref, res_ref):
    # scalars_ref (SMEM, f32[2]): [bias, scale]
    #   bias  = pos_loss_sum  (0 when num_pos == 0)
    #   scale = 1 / num_pos   (1 when num_pos == 0)
    bias = scalars_ref[0]
    scale = scalars_ref[1]

    o = out_ref[...].astype(jnp.float32)        # in-kernel cast: free when mem-bound
    t = target_ref[...].astype(jnp.float32)

    one_m_t = 1.0 - t
    gt2 = one_m_t * one_m_t
    gt4 = gt2 * gt2                             # (1 - target)^4
    neg = jnp.log(1.0 - o) * (o * o) * gt4      # per-pixel negative loss

    res_ref[...] = (-(neg + bias) * scale).astype(res_ref.dtype)


def fast_focal_loss(out, target, ind, mask, cat, res_dtype=None):
    """Pallas implementation of FastFocalLoss.forward(..., is_reduce=True)."""
    B, C, H, W = out.shape
    HW = H * W
    if res_dtype is None:
        res_dtype = out.dtype       # keep HBM write traffic at the input width
    maskf = mask.astype(jnp.float32)

    # --- glue: tiny B x M peak gather in plain JAX (no heatmap transpose/copy) ---
    flat_idx = cat.astype(jnp.int32) * HW + ind.astype(jnp.int32)              # B, M
    pos_pred = jnp.take_along_axis(
        out.reshape(B, C * HW), flat_idx, axis=1).astype(jnp.float32)           # B, M
    # NOTE: same NaN hazard as PyTorch if a masked-out peak gathers pos_pred == 0.
    pos_loss = jnp.log(pos_pred) * jnp.square(1.0 - pos_pred) * maskf
    pos_sum = jnp.sum(pos_loss)
    num_pos = jnp.sum(maskf)

    zero = num_pos == 0.0
    bias = jnp.where(zero, 0.0, pos_sum)                     # 0 reproduces -neg exactly
    scale = jnp.where(zero, 1.0, 1.0 / jnp.where(zero, 1.0, num_pos))
    scalars = jnp.stack([bias, scale]).astype(jnp.float32)   # (2,)

    # --- hot path: per-pixel neg loss + final combine, in Pallas ---
    R, Cc = _lane_dense_shape(B, C, H, W)
    out2d = out.reshape(R, Cc)        # native dtype; cast happens inside kernel
    tgt2d = target.reshape(R, Cc)

    tr, tc = _choose_tiles(R, Cc)
    grid = (pl.cdiv(R, tr), pl.cdiv(Cc, tc))

    # 2-deep double buffering on 3 arrays, plus headroom for Mosaic scratch.
    blk = tr * tc
    vmem_needed = 2 * blk * (out2d.dtype.itemsize
                             + tgt2d.dtype.itemsize
                             + jnp.dtype(res_dtype).itemsize)
    vmem_limit = int(min(48 << 20, max(32 << 20, vmem_needed + (8 << 20))))

    # TODO(synk): if the heatmap is dead after the loss (training step), alias it to
    # the result via input_output_aliases={1: 0} to drop one B*C*H*W HBM allocation.
    res2d = pl.pallas_call(
        _focal_kernel,
        out_shape=jax.ShapeDtypeStruct((R, Cc), res_dtype),
        grid=grid,
        in_specs=[
            pl.BlockSpec(memory_space=pltpu.MemorySpace.SMEM),       # [bias, scale]
            pl.BlockSpec((tr, tc), lambda i, j: (i, j)),             # out
            pl.BlockSpec((tr, tc), lambda i, j: (i, j)),             # target
        ],
        out_specs=pl.BlockSpec((tr, tc), lambda i, j: (i, j)),
        compiler_params=pltpu.CompilerParams(
            dimension_semantics=("parallel", "parallel"),
            vmem_limit_bytes=vmem_limit),
    )(scalars, out2d, tgt2d)

    return res2d.reshape(B, C, H, W)


def _reference(out, target, ind, mask, cat):
    """Pure-JAX transcription of the PyTorch forward (is_reduce=True)."""
    maskf = mask.astype(jnp.float32)
    gt = jnp.power(1.0 - target, 4)
    neg_loss = jnp.log(1.0 - out) * jnp.power(out, 2) * gt
    B, C, H, W = out.shape
    feat = jnp.transpose(out.reshape(B, C, H * W), (0, 2, 1))
    pos_pix = jnp.take_along_axis(feat, ind[:, :, None], axis=1)
    pos_pred = jnp.take_along_axis(pos_pix, cat[:, :, None], axis=2)
    num_pos = maskf.sum()
    pos_loss = (jnp.log(pos_pred) * jnp.power(1.0 - pos_pred, 2) * maskf[:, :, None]).sum()
    safe = jnp.where(num_pos == 0.0, 1.0, num_pos)
    return jnp.where(num_pos == 0.0, -neg_loss, -(pos_loss + neg_loss) / safe)


def _make_inputs(key, B, C, H, W, M):
    k1, k2, k3, k4, k5 = jax.random.split(key, 5)
    out = jax.random.uniform(k1, (B, C, H, W), jnp.float32, minval=0.01, maxval=0.99)
    target = jax.random.uniform(k2, (B, C, H, W), jnp.float32, minval=0.0, maxval=0.99)
    ind = jax.random.randint(k3, (B, M), 0, H * W, dtype=jnp.int32)
    cat = jax.random.randint(k4, (B, M), 0, C, dtype=jnp.int32)
    mask = (jax.random.uniform(k5, (B, M)) > 0.3).astype(jnp.int32)
    return out, target, ind, mask, cat


if __name__ == "__main__":
    key = jax.random.PRNGKey(0)
    f = jax.jit(fast_focal_loss)

    # 1) standard lane-dense shape (HW multiple of 128)
    B, C, H, W, M = 2, 4, 16, 16, 8
    out, target, ind, mask, cat = _make_inputs(key, B, C, H, W, M)
    loss = jax.block_until_ready(f(out, target, ind, mask, cat))
    ref = _reference(out, target, ind, mask, cat)
    assert loss.shape == (B, C, H, W)
    assert jnp.allclose(loss, ref, rtol=1e-5, atol=1e-5), (
        f"mismatch: max abs diff {jnp.max(jnp.abs(loss - ref))}")

    # 2) num_pos == 0 branch
    zero_mask = jnp.zeros((B, M), jnp.int32)
    loss0 = jax.block_until_ready(f(out, target, ind, zero_mask, cat))
    ref0 = _reference(out, target, ind, zero_mask, cat)
    assert jnp.allclose(loss0, ref0, rtol=1e-5, atol=1e-5)

    # 3) odd spatial resolution (HW not a multiple of 128 -> conditional layout path)
    B2, C2, H2, W2, M2 = 2, 4, 15, 10, 8
    out2, target2, ind2, mask2, cat2 = _make_inputs(jax.random.PRNGKey(1), B2, C2, H2, W2, M2)
    loss2 = jax.block_until_ready(f(out2, target2, ind2, mask2, cat2))
    ref2 = _reference(out2, target2, ind2, mask2, cat2)
    assert loss2.shape == (B2, C2, H2, W2)
    assert jnp.allclose(loss2, ref2, rtol=1e-5, atol=1e-5)

    print("KERNEL_OK")
</pallas_src>

<mosaic_0001>
module attributes {stable_mosaic.version = 11 : i64} {
  func.func @_focal_kernel(%arg0: i32, %arg1: i32, %arg2: memref<2xf32, #tpu.memory_space<smem>>, %arg3: memref<8x128xf32, #tpu.memory_space<vmem>>, %arg4: memref<8x128xf32, #tpu.memory_space<vmem>>, %arg5: memref<8x128xf32, #tpu.memory_space<vmem>>) attributes {dimension_semantics = [#tpu.dimension_semantics<parallel>, #tpu.dimension_semantics<parallel>], iteration_bounds = array<i64: 1, 2>, scalar_prefetch = 0 : i64, scratch_operands = 0 : i64, tpu.core_type = #tpu.core_type<tc>, window_params = [{transform_indices = @transform_0, window_bounds = array<i64: 2>}, {transform_indices = @transform_1, window_bounds = array<i64: 8, 128>}, {transform_indices = @transform_2, window_bounds = array<i64: 8, 128>}, {transform_indices = @transform_3, window_bounds = array<i64: 8, 128>}]} {
    %c0 = arith.constant 0 : index
    %0 = memref.load %arg2[%c0] : memref<2xf32, #tpu.memory_space<smem>>
    %c1 = arith.constant 1 : index
    %1 = memref.load %arg2[%c1] : memref<2xf32, #tpu.memory_space<smem>>
    %c0_0 = arith.constant 0 : index
    %c0_1 = arith.constant 0 : index
    %2 = vector.load %arg3[%c0_0, %c0_1] : memref<8x128xf32, #tpu.memory_space<vmem>>, vector<8x128xf32>
    %c0_2 = arith.constant 0 : index
    %c0_3 = arith.constant 0 : index
    %3 = vector.load %arg4[%c0_2, %c0_3] : memref<8x128xf32, #tpu.memory_space<vmem>>, vector<8x128xf32>
    %cst = arith.constant 1.000000e+00 : f32
    %4 = vector.broadcast %cst : f32 to vector<8x128xf32>
    %5 = arith.subf %4, %3 : vector<8x128xf32>
    %6 = arith.mulf %5, %5 : vector<8x128xf32>
    %7 = arith.mulf %6, %6 : vector<8x128xf32>
    %cst_4 = arith.constant 1.000000e+00 : f32
    %8 = vector.broadcast %cst_4 : f32 to vector<8x128xf32>
    %9 = arith.subf %8, %2 : vector<8x128xf32>
    %10 = math.log %9 : vector<8x128xf32>
    %11 = arith.mulf %2, %2 : vector<8x128xf32>
    %12 = arith.mulf %10, %11 : vector<8x128xf32>
    %13 = arith.mulf %12, %7 : vector<8x128xf32>
    %14 = vector.broadcast %0 : f32 to vector<8x128xf32>
    %15 = arith.addf %13, %14 : vector<8x128xf32>
    %cst_5 = arith.constant 0.000000e+00 : f32
    %16 = vector.broadcast %cst_5 : f32 to vector<8x128xf32>
    %17 = arith.subf %16, %15 : vector<8x128xf32>
    %18 = vector.broadcast %1 : f32 to vector<8x128xf32>
    %19 = arith.mulf %17, %18 : vector<8x128xf32>
    %c0_6 = arith.constant 0 : index
    %c0_7 = arith.constant 0 : index
    %20 = vector.load %arg5[%c0_6, %c0_7] : memref<8x128xf32, #tpu.memory_space<vmem>>, vector<8x128xf32>
    tpu.vector_store %arg5[%c0_6, %c0_7], %19 {strides = array<i32>} : memref<8x128xf32, #tpu.memory_space<vmem>>, vector<8x128xf32>,
    return
  }
  func.func @transform_0(%arg0: i32, %arg1: i32) -> i32 {
    %c0_i32 = arith.constant 0 : i32
    %c0_i32_0 = arith.constant 0 : i32
    return %c0_i32 : i32
  }
  func.func @transform_1(%arg0: i32, %arg1: i32) -> (i32, i32) {
    %c0_i32 = arith.constant 0 : i32
    return %arg0, %arg1 : i32, i32
  }
  func.func @transform_2(%arg0: i32, %arg1: i32) -> (i32, i32) {
    %c0_i32 = arith.constant 0 : i32
    return %arg0, %arg1 : i32, i32
  }
  func.func @transform_3(%arg0: i32, %arg1: i32) -> (i32, i32) {
    %c0_i32 = arith.constant 0 : i32
    return %arg0, %arg1 : i32, i32
  }
}

</mosaic_0001>

<bundles_post_ra>
// kernel: fast_focal_loss.1
= control target key start
LH: loop header
LB: loop body
LE: loop exit
PB: predicated region body
PF: predicated region fallthrough
CT: control target
= control target key end

     0   :  { %8 = vsyncpa [#allocation3], 0  ;;  %s494_s12 = smov 0   ;;  %s496_s13 = smov 0   ;;  %s556_s0 = inlined_call_operand.vmem [shape: f32[2], index: 0, kind: input, shape index: {}]   ;;  %s557_s1 = inlined_call_operand.vmem [shape: f32[8,256], index: 1, kind: input, shape index: {}]   ;;  %s558_s2 = inlined_call_operand.vmem [shape: f32[8,256], index: 2, kind: input, shape index: {}]   ;;  %s559_s3 = inlined_call_operand.vmem [shape: f32[8,256], index: 3, kind: output, shape index: {}]  }
   0x1   :  { %s498_s14 = smov 0  }
   0x2 LB: > { %s380_s15 = sadd.s32 4294967295, %s471_s14   ;;  %s23_s16 = sadd.s32 1, %s467_s13  ;;  %s471_s14 = sphi %s498_s14, %s14_s14   ;;  %s467_s13 = sphi %s496_s13, %s563_s13   ;;  %s463_s12 = sphi %s494_s12, %s562_s12  }
   0x3   : > { %p24_p0 = scmp.ge.s32.totalorder %s23_s16, 2  ;;  %p382_p1 = scmp.ge.s32.totalorder %s471_s14, 1 }
   0x4   : > { %p136_p2 = scmp.lt.s32.totalorder %s471_s14, 3  ;;  %p519_p4 = scmp.eq.s32.totalorder %s380_s15, 0 }
   0x5   : > { %s565_s16 = smov (%p24_p0, %s23_s16), 0  ;;  %s149_s21 = sshll.u32 %s556_s0, 4  ;;  %s150_s21 = int_to_ptr.vmem [resolvable:$true] %s149_s21 }
   0x6   : > { %p515_p3 = pnand %p382_p1, %p136_p2  ;;  %s430_s22 = scalar_lea.vmem %s150_s21, 16 }
   0x7   : > { %p431_p7 = scmp.ne.s32.totalorder %s150_s21, %s430_s22  ;;  %p438_p11 = scmp.lt.s32.totalorder %s150_s21, %s150_s21 }
   0x8   : > { %p397_p5 = pneg %p515_p3  ;;  %p439_p12 = scmp.lt.s32.totalorder %s430_s22, %s430_s22 }
   0xa   : > { %p398_p6 = pnand %p519_p4, %p397_p5  ;;  %p440_p13 = por %p439_p12, %p438_p11 }
   0xc   : > { %p432_p8 = pneg %p398_p6 }
   0xe   : > { %p433_p9 = pnand %p432_p8, %p431_p7 }
  0x10   : > { %p434_p10 = pneg %p433_p9 }
  0x12   : > { %p441_p0 = pnand %p440_p13, %p434_p10 }
  0x14   : > { %444 = shalt.err (!%p441_p0)
}
  0x15   : > { %s473_s23 = smov [#allocation2]   ;;  %184 = sbr.rel (%p515_p3) target bundleno = 63 (0x3f), region = 32 }
  0x16   : > { %400 = dma.vmem_to_smem (!%p398_p6), %s150_s21, 16, %s473_s23, [#allocation3]  }
  0x1c   : > { %458 = dma.done.wait (%p519_p4), [#allocation3], 16  }
  0x1d   : > { %460 = vsyncadd (%p519_p4), [#allocation3], 4294967280 }
  0x1e   : > { %190 = sfence }
  0x1f   : > { %p225_p1 = scmp.lt.s32.totalorder %s463_s12, 1  ;;  %s247_s4 = sld [smem:[#allocation2]] }
  0x20   : > { %s390_s5 = sld [smem:[#allocation2 + $0x1]] }
  0x21   : > { %s567_s12 = smov (!%p225_p1, %s463_s12), 1 }
  0x22   : > { %s387_s24 = sshll.u32 %s567_s12, 3 }
  0x23   : > { %s230_s27 = scalar_lea.vmem %s557_s1, %s387_s24  ;;  %s238_s30 = scalar_lea.vmem %s558_s2, %s387_s24 }
  0x24   : > { %v249_v0 = vld [vmem:[%s230_s27] sm:$0xff]  ;;  %s246_s8 = scalar_lea.vmem %s559_s3, %s387_s24 }
  0x25   : > { %v254_v1 = vsub.f32 1.0, %v249_v0  ;;  %v250_v2 = vld [vmem:[%s238_s30] sm:$0xff]  ;;  %v257_v5 = vmul.f32 %v249_v0, %v249_v0  ;;  %v260_v10 = vstv %s247_s4 }
  0x26   : > { %v251_v3 = vsub.f32 1.0, %v250_v2  ;;  %v263_v13 = vstv %s390_s5 }
  0x27   : > { %428 = vlog2.f32 %v254_v1 }
  0x28   : > { %v252_v4 = vmul.f32 %v251_v3, %v251_v3 }
  0x2a   : > { %v253_v7 = vmul.f32 %v252_v4, %v252_v4 }
  0x31   : > { %v429_v6 = vpop.eup %428 }
  0x32   : > { %v256_v8 = vmul.f32 0.6931472, %v429_v6 }
  0x34   : > { %v258_v9 = vmul.f32 %v257_v5, %v256_v8 }
  0x36   : > { %v259_v11 = vmul.f32 %v258_v9, %v253_v7 }
  0x38   : > { %v261_v12 = vadd.f32 %v260_v10, %v259_v11 }
  0x3a   : > { %v262_v14 = vsub.f32 0.0, %v261_v12 }
  0x3c   : > { %v264_v15 = vmul.f32 %v263_v13, %v262_v14 }
  0x3e   : > { %265 = vst [vmem:[%s246_s8] sm:$0xff] %v264_v15 }
  0x3f PF: > { %s14_s14 = sadd.s32 1, %s471_s14   ;;  %s562_s12 = smov %s467_s13 }
  0x40   : > { %p11_p2 = scmp.ge.s32.totalorder %s14_s14, 4   ;;  %s563_s13 = smov %s565_s16 }
  0x42   :  { %13 = sbr.rel (!%p11_p2) target bundleno = 2 (0x2), region = 70 }
  0x49   :  { %293 = vsyncpa [#allocation3], 1 }
  0x4a   :  { %295 = vsyncpa [#allocation3 + $0x1], 1 }

</bundles_post_ra>
